<compile_context>
chip_gen: v7x
topology: tpu7x:2x2x1
jax: 0.10.0
libtpu: 0.0.40
codegen_flags: <defaults>
</compile_context>

<pallas_src>
import functools

import jax
import jax.numpy as jnp
from jax.experimental import pallas as pl
from jax.experimental.pallas import tpu as pltpu

_HP = jax.lax.Precision.HIGHEST


def _round_up(v: int, mult: int = 8) -> int:
    return (v + mult - 1) // mult * mult


def _fused_kernel(x_ref, other_ref, slab_ref, o_ref, lhs_ref,
                  *, n, m, B, off_x, off_one):
    # x_ref:     (1, 1, n)   this instance's input row
    # other_ref: (1, B, m)   this instance's `other`
    # slab_ref:  (P, m)      folded parameters (shared across all instances)
    # o_ref:     (1, B, m)   output
    # lhs_ref:   (B_pad, P)  VMEM scratch for the assembled LHS
    B_pad = lhs_ref.shape[0]

    # Assemble the single-matmul LHS:  [ other | x (broadcast) | 1 | 0-pad ].
    lhs_ref[...] = jnp.zeros_like(lhs_ref)
    lhs_ref[0:B, 0:m] = other_ref[0]
    lhs_ref[:, off_x:off_x + n] = jnp.broadcast_to(x_ref[0], (B_pad, n))
    lhs_ref[:, off_one:off_one + 1] = jnp.ones((B_pad, 1), jnp.float32)

    # One MXU pass replaces (x @ W012 + c) and (other @ A + r).
    out = jnp.dot(lhs_ref[...], slab_ref[...],
                  preferred_element_type=jnp.float32, precision=_HP)
    o_ref[0] = out[0:B, :].astype(o_ref.dtype)


def prepare_fused_params(w0, b0, w1, b1, w2, b2):
    """Fold the three Linear layers (PyTorch (out, in) weight layout) into one
    affine map, packed into a single 8-row-aligned slab.  Call ONCE per set of
    weights; all transposes / weight products are hoisted out of the per-call
    path.  Uses Precision.HIGHEST so the one-time fold adds no bf16 drift."""
    m, n = w0.shape
    w0t, w1t, w2t = w0.T, w1.T, w2.T
    w12 = jnp.dot(w1t, w2t, precision=_HP)                   # W1^T W2^T   (m, m)
    a_mat = w12 + w2t                                        # other-mult  (m, m)
    w012 = jnp.dot(w0t, w12, precision=_HP)                  # input-mult  (n, m)
    c_row = (jnp.dot(b0[None, :], w12, precision=_HP)
             + jnp.dot(b1[None, :], w2t, precision=_HP)
             + b2[None, :])                                  # bias fold   (1, m)

    off_a = 0
    off_x = _round_up(m)              # 24
    off_one = off_x + _round_up(n)    # 48
    P = _round_up(off_one + 1)        # 56  (sublane-aligned slab height)

    slab = jnp.zeros((P, m), jnp.float32)
    slab = slab.at[off_a:off_a + m, :].set(a_mat.astype(jnp.float32))
    slab = slab.at[off_x:off_x + n, :].set(w012.astype(jnp.float32))
    slab = slab.at[off_one, :].set(c_row[0].astype(jnp.float32))
    return slab, dict(n=n, m=m, off_x=off_x, off_one=off_one, P=P)


def fused_model_batched(xs, others, slab, dims):
    """xs: (N, 1, n), others: (N, B, m) -> (N, B, m).
    One pallas_call for all N instances; the instance axis is the grid axis
    (marked "parallel" so v7x's two TensorCores split it)."""
    n, m = dims["n"], dims["m"]
    off_x, off_one, P = dims["off_x"], dims["off_one"], dims["P"]
    N, B, _ = others.shape
    B_pad = _round_up(B)

    kernel = functools.partial(_fused_kernel, n=n, m=m, B=B,
                               off_x=off_x, off_one=off_one)
    return pl.pallas_call(
        kernel,
        out_shape=jax.ShapeDtypeStruct((N, B, m), jnp.float32),
        grid=(N,),
        in_specs=[
            pl.BlockSpec((1, 1, n), lambda i: (i, 0, 0)),   # input row
            pl.BlockSpec((1, B, m), lambda i: (i, 0, 0)),   # other
            pl.BlockSpec((P, m), lambda i: (0, 0)),         # folded params
        ],
        out_specs=pl.BlockSpec((1, B, m), lambda i: (i, 0, 0)),
        scratch_shapes=[pltpu.VMEM((B_pad, P), jnp.float32)],
        compiler_params=pltpu.CompilerParams(
            dimension_semantics=("parallel",)),
    )(xs, others, slab)


def fused_model(x, other, slab, dims):
    """Single-instance entry matching the module: x (1, n), other (B, m)."""
    return fused_model_batched(x[None], other[None], slab, dims)[0]


def reference(x, other, w0, b0, w1, b1, w2, b2):
    h = jnp.dot(x, w0.T, precision=_HP) + b0
    h = h + other
    h = jnp.dot(h, w1.T, precision=_HP) + b1
    h = h + other
    h = jnp.dot(h, w2.T, precision=_HP) + b2
    return h


if __name__ == "__main__":
    n, m, B = 23, 23, 30   # input (1, 23), other (30, 23)

    key = jax.random.PRNGKey(0)
    k_in, k_oth, k_w0, k_b0, k_w1, k_b1, k_w2, k_b2, k_bx, k_bo = \
        jax.random.split(key, 10)

    x = jax.random.normal(k_in, (1, n), dtype=jnp.float32)
    other = jax.random.normal(k_oth, (B, m), dtype=jnp.float32)

    # PyTorch Linear parameter shapes: W (out, in), b (out,)
    w0 = jax.random.normal(k_w0, (m, n), dtype=jnp.float32) * 0.1
    b0 = jax.random.normal(k_b0, (m,), dtype=jnp.float32) * 0.1
    w1 = jax.random.normal(k_w1, (m, m), dtype=jnp.float32) * 0.1
    b1 = jax.random.normal(k_b1, (m,), dtype=jnp.float32) * 0.1
    w2 = jax.random.normal(k_w2, (m, m), dtype=jnp.float32) * 0.1
    b2 = jax.random.normal(k_b2, (m,), dtype=jnp.float32) * 0.1

    # One-time weight folding (hoisted out of the per-call path).
    slab, dims = prepare_fused_params(w0, b0, w1, b1, w2, b2)
    slab = jax.block_until_ready(slab)

    # --- single-instance call (matches the PyTorch module exactly) ---
    out = jax.block_until_ready(fused_model(x, other, slab, dims))
    ref = reference(x, other, w0, b0, w1, b1, w2, b2)
    assert out.shape == (B, m), out.shape
    assert jnp.allclose(out, ref, atol=1e-3, rtol=1e-3), "single-call mismatch"

    # --- batched call: N invocations amortized into one pallas_call ---
    N = 4
    xs = jax.random.normal(k_bx, (N, 1, n), dtype=jnp.float32)
    others = jax.random.normal(k_bo, (N, B, m), dtype=jnp.float32)
    outs = jax.block_until_ready(fused_model_batched(xs, others, slab, dims))
    refs = jax.vmap(lambda xx, oo: reference(xx, oo, w0, b0, w1, b1, w2, b2))(
        xs, others)
    assert outs.shape == (N, B, m), outs.shape
    assert jnp.allclose(outs, refs, atol=1e-3, rtol=1e-3), "batched mismatch"

    print("KERNEL_OK")
</pallas_src>

<mosaic_0001>
module attributes {stable_mosaic.version = 11 : i64} {
  func.func @_fused_kernel(%arg0: i32, %arg1: memref<1x1x23xf32, #tpu.memory_space<vmem>>, %arg2: memref<1x30x23xf32, #tpu.memory_space<vmem>>, %arg3: memref<56x23xf32, #tpu.memory_space<vmem>>, %arg4: memref<1x30x23xf32, #tpu.memory_space<vmem>>, %arg5: memref<32x56xf32, #tpu.memory_space<vmem>>) attributes {dimension_semantics = [#tpu.dimension_semantics<parallel>], iteration_bounds = array<i64: 1>, scalar_prefetch = 0 : i64, scratch_operands = 1 : i64, tpu.core_type = #tpu.core_type<tc>, window_params = [{transform_indices = @transform_0, window_bounds = array<i64: 1, 1, 23>}, {transform_indices = @transform_1, window_bounds = array<i64: 1, 30, 23>}, {pipeline_mode = #tpu.pipeline_mode<synchronous>, transform_indices = @transform_2, window_bounds = array<i64: 56, 23>}, {transform_indices = @transform_3, window_bounds = array<i64: 1, 30, 23>}]} {
    %cst = arith.constant 0.000000e+00 : f32
    %0 = vector.broadcast %cst : f32 to vector<32x56xf32>
    %c0 = arith.constant 0 : index
    %c0_0 = arith.constant 0 : index
    %1 = vector.load %arg5[%c0, %c0_0] : memref<32x56xf32, #tpu.memory_space<vmem>>, vector<32x56xf32>
    tpu.vector_store %arg5[%c0, %c0_0], %0 {strides = array<i32>} : memref<32x56xf32, #tpu.memory_space<vmem>>, vector<32x56xf32>,
    %c0_1 = arith.constant 0 : index
    %c0_2 = arith.constant 0 : index
    %c0_3 = arith.constant 0 : index
    %2 = vector.load %arg2[%c0_1, %c0_2, %c0_3] : memref<1x30x23xf32, #tpu.memory_space<vmem>>, vector<1x30x23xf32>
    %3 = vector.shape_cast %2 : vector<1x30x23xf32> to vector<30x23xf32>
    %c0_4 = arith.constant 0 : index
    %c0_5 = arith.constant 0 : index
    %4 = vector.load %arg5[%c0_4, %c0_5] : memref<32x56xf32, #tpu.memory_space<vmem>>, vector<30x23xf32>
    tpu.vector_store %arg5[%c0_4, %c0_5], %3 {strides = array<i32>} : memref<32x56xf32, #tpu.memory_space<vmem>>, vector<30x23xf32>,
    %c0_6 = arith.constant 0 : index
    %c0_7 = arith.constant 0 : index
    %c0_8 = arith.constant 0 : index
    %5 = vector.load %arg1[%c0_6, %c0_7, %c0_8] : memref<1x1x23xf32, #tpu.memory_space<vmem>>, vector<1x1x23xf32>
    %6 = vector.shape_cast %5 : vector<1x1x23xf32> to vector<1x23xf32>
    %7 = vector.shape_cast %6 : vector<1x23xf32> to vector<1x23xf32>
    %8 = vector.broadcast %7 : vector<1x23xf32> to vector<32x23xf32>
    %c0_9 = arith.constant 0 : index
    %c24 = arith.constant 24 : index
    %9 = vector.load %arg5[%c0_9, %c24] : memref<32x56xf32, #tpu.memory_space<vmem>>, vector<32x23xf32>
    tpu.vector_store %arg5[%c0_9, %c24], %8 {strides = array<i32>} : memref<32x56xf32, #tpu.memory_space<vmem>>, vector<32x23xf32>,
    %cst_10 = arith.constant 1.000000e+00 : f32
    %10 = vector.broadcast %cst_10 : f32 to vector<32x1xf32>
    %c0_11 = arith.constant 0 : index
    %c48 = arith.constant 48 : index
    %11 = vector.load %arg5[%c0_11, %c48] : memref<32x56xf32, #tpu.memory_space<vmem>>, vector<32x1xf32>
    tpu.vector_store %arg5[%c0_11, %c48], %10 {strides = array<i32>} : memref<32x56xf32, #tpu.memory_space<vmem>>, vector<32x1xf32>,
    %c0_12 = arith.constant 0 : index
    %c0_13 = arith.constant 0 : index
    %12 = vector.load %arg5[%c0_12, %c0_13] : memref<32x56xf32, #tpu.memory_space<vmem>>, vector<32x56xf32>
    %c0_14 = arith.constant 0 : index
    %c0_15 = arith.constant 0 : index
    %13 = vector.load %arg3[%c0_14, %c0_15] : memref<56x23xf32, #tpu.memory_space<vmem>>, vector<56x23xf32>
    %cst_16 = arith.constant dense<0.000000e+00> : vector<32x23xf32>
    %14 = tpu.matmul %12, %13, %cst_16 {dimension_numbers = #tpu.dot_dimension_numbers<[1], [0], [0], [1], [0, 0, 1, 1], [], []>, precision = #tpu.contract_precision<fp32>} : vector<32x56xf32>, vector<56x23xf32>, vector<32x23xf32> -> vector<32x23xf32>
    %15 = vector.extract_strided_slice %14 {offsets = [0, 0], sizes = [30, 23], strides = [1, 1]} : vector<32x23xf32> to vector<30x23xf32>
    %c0_17 = arith.constant 0 : index
    %c0_18 = arith.constant 0 : index
    %c0_19 = arith.constant 0 : index
    %16 = vector.load %arg4[%c0_17, %c0_18, %c0_19] : memref<1x30x23xf32, #tpu.memory_space<vmem>>, vector<1x30x23xf32>
    %17 = vector.shape_cast %16 : vector<1x30x23xf32> to vector<30x23xf32>
    %18 = vector.shape_cast %15 : vector<30x23xf32> to vector<1x30x23xf32>
    tpu.vector_store %arg4[%c0_17, %c0_18, %c0_19], %18 {strides = array<i32>} : memref<1x30x23xf32, #tpu.memory_space<vmem>>, vector<1x30x23xf32>,
    return
  }
  func.func @transform_0(%arg0: i32) -> (i32, i32, i32) {
    %c0_i32 = arith.constant 0 : i32
    %c0_i32_0 = arith.constant 0 : i32
    %c0_i32_1 = arith.constant 0 : i32
    return %arg0, %c0_i32, %c0_i32_0 : i32, i32, i32
  }
  func.func @transform_1(%arg0: i32) -> (i32, i32, i32) {
    %c0_i32 = arith.constant 0 : i32
    %c0_i32_0 = arith.constant 0 : i32
    %c0_i32_1 = arith.constant 0 : i32
    return %arg0, %c0_i32, %c0_i32_0 : i32, i32, i32
  }
  func.func @transform_2(%arg0: i32) -> (i32, i32) {
    %c0_i32 = arith.constant 0 : i32
    %c0_i32_0 = arith.constant 0 : i32
    %c0_i32_1 = arith.constant 0 : i32
    return %c0_i32, %c0_i32_0 : i32, i32
  }
  func.func @transform_3(%arg0: i32) -> (i32, i32, i32) {
    %c0_i32 = arith.constant 0 : i32
    %c0_i32_0 = arith.constant 0 : i32
    %c0_i32_1 = arith.constant 0 : i32
    return %arg0, %c0_i32, %c0_i32_0 : i32, i32, i32
  }
}

</mosaic_0001>

<bundles_post_ra>
// kernel: tpu_custom_call.1
= control target key start
LH: loop header
LB: loop body
LE: loop exit
PB: predicated region body
PF: predicated region fallthrough
CT: control target
= control target key end

     0   :  { %vm14_vm0 = vcmask 457728   ;;  %vm23_vm1 = vcmask 187392   ;;  %vm27_vm2 = vcmask 185344   ;;  %v1014_v1 = vmov 0.0   ;;  %s1015_s18 = smov 24   ;;  %s1199_s0 = inlined_call_operand.vmem [shape: f32[1,1,23], index: 0, kind: input, shape index: {}]   ;;  %s1200_s1 = inlined_call_operand.vmem [shape: f32[1,30,23], index: 1, kind: input, shape index: {}]   ;;  %s1201_s2 = inlined_call_operand.vmem [shape: f32[56,23], index: 2, kind: input, shape index: {}]   ;;  %s1202_s3 = inlined_call_operand.vmem [shape: f32[1,30,23], index: 3, kind: output, shape index: {}]  }
   0x1   :  { %v732_v0 = vld [vmem:[%s1199_s0] ss:$0 sm:$0xff]  ;;  %15 = vst.msk [vmem:[#allocation2] sm:$0xff] %vm14_vm0, %v1014_v1  ;;  %16 = vst.msk [vmem:[#allocation2 + $0x8] sm:$0xff] %vm14_vm0, %v1014_v1  ;;  %v20_v3 = vld [vmem:[%s1200_s1 + $0x8] sm:$0xff]  ;;  %vm38_vm3 = vcmask 384192  }
   0x2   :  { %17 = vst.msk [vmem:[#allocation2 + $0x10] sm:$0xff] %vm14_vm0, %v1014_v1  ;;  %18 = vst.msk [vmem:[#allocation2 + $0x18] sm:$0xff] %vm14_vm0, %v1014_v1  ;;  %v19_v2 = vld [vmem:[%s1200_s1] sm:$0xff]  ;;  %35 = vrot.lane.b32.xlu0 %v732_v0, %s1015_s18  ;;  %v21_v4 = vld [vmem:[%s1200_s1 + $0x10] sm:$0xff]  ;;  %vm43_vm4 = vcmask 400768   ;;  %v1016_v57 = vmov 1.0  }
   0x3   :  { %v22_v5 = vld [vmem:[%s1200_s1 + $0x18] sm:$0x3f]  ;;  %24 = vst.msk [vmem:[#allocation2] sm:$0xff] %vm23_vm1, %v19_v2  ;;  %25 = vst.msk [vmem:[#allocation2 + $0x8] sm:$0xff] %vm23_vm1, %v20_v3  ;;  %v52_v6 = vld [vmem:[%s1201_s2] sm:$0xff] }
   0x4   :  { %26 = vst.msk [vmem:[#allocation2 + $0x10] sm:$0xff] %vm23_vm1, %v21_v4  ;;  %v53_v7 = vld [vmem:[%s1201_s2 + $0x8] sm:$0xff]  ;;  %v72_v8 = vand.u32 4294901760, %v52_v6  ;;  %v54_v9 = vld [vmem:[%s1201_s2 + $0x10] sm:$0xff]  ;;  %v55_v10 = vld [vmem:[%s1201_s2 + $0x18] sm:$0xff] }
   0x5   :  { %28 = vst.msk [vmem:[#allocation2 + $0x18] sm:$0x3f] %vm27_vm2, %v22_v5  ;;  %v75_v11 = vand.u32 4294901760, %v53_v7  ;;  %v78_v12 = vand.u32 4294901760, %v54_v9  ;;  %v81_v13 = vand.u32 4294901760, %v55_v10  ;;  %v56_v14 = vld [vmem:[%s1201_s2 + $0x20] sm:$0xff] }
   0x6   :  { %v57_v15 = vld [vmem:[%s1201_s2 + $0x28] sm:$0xff]  ;;  %v84_v16 = vand.u32 4294901760, %v56_v14  ;;  %v185_v18 = vsub.f32 %v52_v6, %v72_v8  ;;  %v1093_v35 = vld [vmem:[%s1201_s2 + $0x30] sm:$0xff] }
   0x7   :  { %v87_v17 = vand.u32 4294901760, %v57_v15  ;;  %v1078_v19 = vpack.c.bf16 %v75_v11, %v72_v8  ;;  %v1080_v20 = vpack.c.bf16 %v81_v13, %v78_v12  ;;  %v192_v21 = vsub.f32 %v53_v7, %v75_v11 }
   0x8   :  { %v199_v22 = vsub.f32 %v54_v9, %v78_v12  ;;  %v186_v23 = vand.u32 4294901760, %v185_v18  ;;  %v206_v24 = vsub.f32 %v55_v10, %v81_v13  ;;  %v213_v27 = vsub.f32 %v56_v14, %v84_v16 }
   0x9   :  { %956 = vmatprep.subr.bf16.mxu0 %v1078_v19  ;;  %920 = vmatprep.subr.bf16.mxu1 %v1078_v19  ;;  %v193_v25 = vand.u32 4294901760, %v192_v21  ;;  %v220_v28 = vsub.f32 %v57_v15, %v87_v17  ;;  %v1086_v29 = vpack.c.bf16 %v87_v17, %v84_v16  ;;  %v1104_v44 = vand.u32 4294901760, %v1093_v35 }
   0xa   :  { %v200_v26 = vand.u32 4294901760, %v199_v22  ;;  %958 = vmatpush3.bf16.msra.mxu0 %v1078_v19  ;;  %922 = vmatpush3.bf16.msra.mxu1 %v1078_v19  ;;  %v207_v30 = vand.u32 4294901760, %v206_v24  ;;  %v187_v31 = vsub.f32 %v185_v18, %v186_v23  ;;  %v214_v34 = vand.u32 4294901760, %v213_v27 }
   0xb   :  { %960 = vmatprep.subr.bf16.mxu0 %v1080_v20  ;;  %924 = vmatprep.subr.bf16.mxu1 %v1080_v20  ;;  %v194_v32 = vsub.f32 %v192_v21, %v193_v25  ;;  %v221_v38 = vand.u32 4294901760, %v220_v28  ;;  %v967_v51 = vpack.c.bf16 %v193_v25, %v186_v23  ;;  %v1116_v53 = vpack.c.bf16 %v192_v21, %v185_v18 }
   0xc   :  { %v201_v33 = vsub.f32 %v199_v22, %v200_v26  ;;  %v1095_v36 = vpack.c.bf16 %v207_v30, %v200_v26  ;;  %v208_v37 = vsub.f32 %v206_v24, %v207_v30  ;;  %v215_v40 = vsub.f32 %v213_v27, %v214_v34 }
   0xd   :  { %v1099_v42 = vpack.c.bf16 %v221_v38, %v214_v34  ;;  %v222_v43 = vsub.f32 %v220_v28, %v221_v38  ;;  %v188_v45 = vand.u32 4294901760, %v187_v31  ;;  %v195_v46 = vand.u32 4294901760, %v194_v32 }
   0xe   :  { %v202_v39 = vand.u32 4294901760, %v201_v33  ;;  %962 = vmatpush3.bf16.msra.mxu0 %v1080_v20  ;;  %926 = vmatpush3.bf16.msra.mxu1 %v1080_v20  ;;  %v209_v41 = vand.u32 4294901760, %v208_v37  ;;  %v216_v47 = vand.u32 4294901760, %v215_v40  ;;  %v1118_v54 = vpack.c.bf16 %v206_v24, %v199_v22 }
   0xf   :  { %964 = vmatprep.subr.bf16.mxu0 %v1086_v29  ;;  %928 = vmatprep.subr.bf16.mxu1 %v1086_v29  ;;  %v223_v49 = vand.u32 4294901760, %v222_v43  ;;  %v931_v52 = vpack.c.bf16 %v195_v46, %v188_v45  ;;  %v1120_v55 = vpack.c.bf16 %v220_v28, %v213_v27  ;;  %v227_v16 = vsub.f32 %v1093_v35, %v1104_v44 }
  0x10   :  { %v1106_v48 = vpack.c.bf16 %v209_v41, %v202_v39 }
  0x11   :  { %v1110_v50 = vpack.c.bf16 %v223_v49, %v216_v47  ;;  %v228_v23 = vand.u32 4294901760, %v227_v16 }
  0x12   :  { %966 = vmatpush3.bf16.msra.mxu0 %v1086_v29  ;;  %930 = vmatpush3.bf16.msra.mxu1 %v1086_v29 }
  0x13   :  { %871 = vmatprep.subr.mxu0 %v1104_v44  ;;  %811 = vmatprep.subr.mxu1 %v1104_v44  ;;  %v229_v26 = vsub.f32 %v227_v16, %v228_v23 }
  0x15   :  { %v230_v27 = vand.u32 4294901760, %v229_v26 }
  0x16   :  { %872 = vmatpush3.msra.mxu0 %v1104_v44  ;;  %812 = vmatpush3.msra.mxu1 %v1104_v44 }
  0x17   :  { %968 = vmatprep.subr.bf16.mxu0 %v967_v51  ;;  %932 = vmatprep.subr.bf16.mxu1 %v931_v52 }
  0x74   :  { %v36_v56 = vpop.permute.xlu0 %35 }
  0x75   :  { %39 = vst.msk [vmem:[#allocation2] sm:$0xff] %vm38_vm3, %v36_v56  ;;  %40 = vst.msk [vmem:[#allocation2 + $0x8] sm:$0xff] %vm38_vm3, %v36_v56 }
  0x76   :  { %41 = vst.msk [vmem:[#allocation2 + $0x10] sm:$0xff] %vm38_vm3, %v36_v56  ;;  %42 = vst.msk [vmem:[#allocation2 + $0x18] sm:$0xff] %vm38_vm3, %v36_v56 }
  0x77   :  { %44 = vst.msk [vmem:[#allocation2] sm:$0xff] %vm43_vm4, %v1016_v57  ;;  %45 = vst.msk [vmem:[#allocation2 + $0x8] sm:$0xff] %vm43_vm4, %v1016_v57 }
  0x78   :  { %46 = vst.msk [vmem:[#allocation2 + $0x10] sm:$0xff] %vm43_vm4, %v1016_v57  ;;  %47 = vst.msk [vmem:[#allocation2 + $0x18] sm:$0xff] %vm43_vm4, %v1016_v57 }
  0x7e   :  { %v48_v58 = vld [vmem:[#allocation2] sm:$0xff]  ;;  %v49_v59 = vld [vmem:[#allocation2 + $0x8] sm:$0xff] }
  0x7f   :  { %v50_v60 = vld [vmem:[#allocation2 + $0x10] sm:$0xff]  ;;  %v60_v61 = vsel %vm14_vm0, %v48_v58, 0  ;;  %v63_v62 = vsel %vm14_vm0, %v49_v59, 0  ;;  %v51_v0 = vld [vmem:[#allocation2 + $0x18] sm:$0xff] }
  0x80   :  { %v66_v63 = vsel %vm14_vm0, %v50_v60, 0  ;;  %v143_v1 = vand.u32 4294901760, %v60_v61  ;;  %v1125_v2 = vand.u32 4294901760, %v63_v62  ;;  %v69_v4 = vsel %vm14_vm0, %v51_v0, 0 }
  0x81   :  { %v1127_v3 = vand.u32 4294901760, %v66_v63  ;;  %v1130_v5 = vand.u32 4294901760, %v69_v4 }
  0x82   :  { %v144_v6 = vsub.f32 %v60_v61, %v143_v1  ;;  %v1133_v7 = vsub.f32 %v63_v62, %v1125_v2 }
  0x83   :  { %v1136_v8 = vsub.f32 %v66_v63, %v1127_v3  ;;  %v1139_v9 = vsub.f32 %v69_v4, %v1130_v5 }
  0x84   :  { %v145_v10 = vand.u32 4294901760, %v144_v6  ;;  %v155_v11 = vand.u32 4294901760, %v1133_v7 }
  0x85   :  { %v165_v12 = vand.u32 4294901760, %v1136_v8  ;;  %v175_v13 = vand.u32 4294901760, %v1139_v9 }
  0x86   :  { %873 = vmatprep.mubr.f32.mxu0 %v145_v10  ;;  %v146_v14 = vsub.f32 %v144_v6, %v145_v10  ;;  %v156_v15 = vsub.f32 %v1133_v7, %v155_v11 }
  0x87   :  { %v166_v17 = vsub.f32 %v1136_v8, %v165_v12  ;;  %874 = vmatmul.mubr.f32.vlgmr.msra.gmra.mrb[0].mxu0 %v155_v11  ;;  %v176_v18 = vsub.f32 %v1139_v9, %v175_v13 }
  0x88   :  { %970 = vmatpush3.bf16.msra.mxu0 %v967_v51  ;;  %v147_v21 = vand.u32 4294901760, %v146_v14  ;;  %v157_v22 = vand.u32 4294901760, %v156_v15  ;;  %876 = vmatprep.mubr.f32.mxu0 %v165_v12 }
  0x89   :  { %972 = vmatprep.subr.bf16.mxu0 %v1095_v36  ;;  %v167_v24 = vand.u32 4294901760, %v166_v17  ;;  %v177_v25 = vand.u32 4294901760, %v176_v18 }
  0x8a   :  { %813 = vmatprep.mubr.f32.mxu1 %v147_v21 }
  0x8b   :  { %814 = vmatmul.mubr.f32.vlgmr.msra.gmra.mrb[0].mxu1 %v157_v22  ;;  %877 = vmatmul.mubr.f32.gmra.mrb[2].mxu0 %v175_v13 }
  0x8c   :  { %934 = vmatpush3.bf16.msra.mxu1 %v931_v52  ;;  %974 = vmatpush3.bf16.msra.mxu0 %v1095_v36 }
  0x8d   :  { %936 = vmatprep.subr.bf16.mxu1 %v1106_v48  ;;  %976 = vmatprep.subr.bf16.mxu0 %v1099_v42 }
  0x8e   :  { %816 = vmatprep.mubr.f32.mxu1 %v167_v24  ;;  %893 = vmatprep.mubr.f32.mxu0 %v143_v1 }
  0x8f   :  { %817 = vmatmul.mubr.f32.gmra.mrb[2].mxu1 %v177_v25 }
  0x90   :  { %938 = vmatpush3.bf16.msra.mxu1 %v1106_v48  ;;  %978 = vmatpush3.bf16.msra.mxu0 %v1099_v42 }
  0x91   :  { %940 = vmatprep.subr.bf16.mxu1 %v1110_v50  ;;  %891 = vmatprep.subr.mxu0 %v228_v23 }
  0x92   :  { %833 = vmatprep.mubr.f32.mxu1 %v143_v1 }
  0x94   :  { %942 = vmatpush3.bf16.msra.mxu1 %v1110_v50  ;;  %892 = vmatpush3.msra.mxu0 %v228_v23 }
  0x95   :  { %980 = vmatprep.subr.bf16.mxu0 %v1078_v19  ;;  %894 = vmatmul.mubr.f32.vlgmr.msra.gmra.mrb[0].mxu0 %v1125_v2 }
  0x96   :  { %982 = vmatpush3.bf16.msra.mxu0 %v1078_v19  ;;  %831 = vmatprep.subr.mxu1 %v230_v27 }
  0x97   :  { %984 = vmatprep.subr.bf16.mxu0 %v1080_v20  ;;  %896 = vmatprep.mubr.f32.mxu0 %v1127_v3 }
  0x98   :  { %832 = vmatpush3.msra.mxu1 %v230_v27 }
  0x99   :  { %944 = vmatprep.subr.bf16.mxu1 %v1116_v53  ;;  %834 = vmatmul.mubr.f32.vlgmr.msra.gmra.mrb[0].mxu1 %v1125_v2 }
  0x9a   :  { %946 = vmatpush3.bf16.msra.mxu1 %v1116_v53  ;;  %986 = vmatpush3.bf16.msra.mxu0 %v1080_v20 }
  0x9b   :  { %948 = vmatprep.subr.bf16.mxu1 %v1118_v54  ;;  %988 = vmatprep.subr.bf16.mxu0 %v1086_v29 }
  0x9c   :  { %897 = vmatmul.mubr.f32.gmra.mrb[2].mxu0 %v1130_v5  ;;  %836 = vmatprep.mubr.f32.mxu1 %v1127_v3 }
  0x9d   :  { %913 = vmatprep.mubr.f32.mxu0 %v143_v1  ;;  %837 = vmatmul.mubr.f32.gmra.mrb[2].mxu1 %v1130_v5 }
  0x9e   :  { %950 = vmatpush3.bf16.msra.mxu1 %v1118_v54  ;;  %990 = vmatpush3.bf16.msra.mxu0 %v1086_v29 }
  0x9f   :  { %952 = vmatprep.subr.bf16.mxu1 %v1120_v55  ;;  %911 = vmatprep.subr.mxu0 %v1104_v44 }
  0xa0   :  { %853 = vmatprep.mubr.f32.mxu1 %v144_v6 }
  0xa2   :  { %954 = vmatpush3.bf16.msra.mxu1 %v1120_v55  ;;  %912 = vmatpush3.msra.mxu0 %v1104_v44 }
  0xa3   :  { %914 = vmatmul.mubr.f32.vlgmr.msra.gmra.mrb[0].mxu0 %v1125_v2  ;;  %851 = vmatprep.subr.mxu1 %v227_v16 }
  0xa4   :  { %916 = vmatprep.mubr.f32.mxu0 %v1127_v3 }
  0xa6   :  { %852 = vmatpush3.msra.mxu1 %v227_v16 }
  0xa7   :  { %854 = vmatmul.mubr.f32.vlgmr.msra.gmra.mrb[0].mxu1 %v1133_v7  ;;  %917 = vmatmul.mubr.f32.gmra.mrb[2].mxu0 %v1130_v5 }
  0xa8   :  { %856 = vmatprep.mubr.f32.mxu1 %v1136_v8 }
  0xab   :  { %857 = vmatmul.mubr.f32.gmra.mrb[2].mxu1 %v1139_v9 }
 0x176   :  { %v915_v19 = vpop.f32.mrb[0].mxu0 }
 0x177   :  { %v702_v20 = vpop.f32.mrb[1].mxu0 }
 0x17a   :  { %v855_v28 = vpop.f32.mrb[0].mxu1  ;;  %v918_v29 = vpop.f32.mrb[2].mxu0 }
 0x17b   :  { %v991_v30 = vadd.f32 %v915_v19, %v855_v28  ;;  %v389_v31 = vpop.f32.mrb[1].mxu1  ;;  %v714_v32 = vpop.f32.mrb[3].mxu0 }
 0x17c   :  { %v992_v33 = vadd.f32 %v702_v20, %v389_v31 }
 0x17d   :  { %725 = vst.msk [vmem:[%s1202_s3 + $0x8] sm:$0xff] %vm23_vm1, %v991_v30 }
 0x17e   :  { %724 = vst.msk [vmem:[%s1202_s3] sm:$0xff] %vm23_vm1, %v992_v33  ;;  %v858_v34 = vpop.f32.mrb[2].mxu1 }
 0x17f   :  { %v993_v35 = vadd.f32 %v918_v29, %v858_v34  ;;  %v403_v36 = vpop.f32.mrb[3].mxu1 }
 0x180   :  { %v994_v37 = vadd.f32 %v714_v32, %v403_v36 }
 0x181   :  { %727 = vst.msk [vmem:[%s1202_s3 + $0x18] sm:$0x3f] %vm27_vm2, %v993_v35 }
 0x182   :  { %726 = vst.msk [vmem:[%s1202_s3 + $0x10] sm:$0xff] %vm23_vm1, %v994_v37 }

</bundles_post_ra>
